<compile_context>
chip_gen: v7x
topology: tpu7x:2x2x1
jax: 0.10.0
libtpu: 0.0.40
codegen_flags: <defaults>
</compile_context>

<pallas_src>
import functools
import math

import jax
import jax.numpy as jnp
from jax import lax
from jax.experimental import pallas as pl
from jax.experimental.pallas import tpu as pltpu


def _rel_pos_encoding_kernel(x_ref, o_ref, *, block_seq, d_model):
    """Add sinusoidal PE to one (block_seq, d_model) tile of x."""
    seq_blk = pl.program_id(1)

    x = x_ref[...].astype(jnp.float32)                       # (block_seq, d_model)

    row = lax.broadcasted_iota(jnp.int32, (block_seq, d_model), 0)
    col = lax.broadcasted_iota(jnp.int32, (block_seq, d_model), 1)

    pos = (row + seq_blk * block_seq).astype(jnp.float32)
    pair = (col - (col % 2)).astype(jnp.float32)             # 2*i for cols 2i, 2i+1
    is_odd = (col % 2).astype(jnp.float32)

    inv_freq = jnp.exp(pair * (-(math.log(10000.0) / d_model)))
    # cos(t) == sin(t + pi/2): single EUP sin per element, no select needed.
    angle = pos * inv_freq + is_odd * (0.5 * math.pi)
    pe = jnp.sin(angle)

    o_ref[...] = (x + pe).astype(o_ref.dtype)


def relative_positional_encoding(x, *, block_seq=None):
    """Pallas forward of RelativePositionalEncoding (deterministic / eval mode).

    x: (batch, seq_len, d_model) float array. Returns x + PE in x.dtype.
    """
    # TODO(synk): training-mode dropout (pltpu PRNG) not implemented; this is
    # the eval-mode forward where nn.Dropout is the identity.
    b, s, d = x.shape
    assert d % 2 == 0, "d_model must be even (same constraint as the PyTorch module)"

    if block_seq is None:
        # ~1 MiB of f32 per tile, multiple of 8; take the full seq if it fits.
        tgt = max(8, ((1 << 20) // (d * 4)) // 8 * 8)
        block_seq = s if s <= tgt else tgt

    grid = (b, pl.cdiv(s, block_seq))
    kernel = functools.partial(
        _rel_pos_encoding_kernel, block_seq=block_seq, d_model=d
    )

    in_spec = pl.BlockSpec((pl.Squeezed(), block_seq, d), lambda bi, si: (bi, si, 0))
    out_spec = pl.BlockSpec((pl.Squeezed(), block_seq, d), lambda bi, si: (bi, si, 0))

    return pl.pallas_call(
        kernel,
        out_shape=jax.ShapeDtypeStruct((b, s, d), x.dtype),
        grid_spec=pltpu.PrefetchScalarGridSpec(
            num_scalar_prefetch=0,
            grid=grid,
            in_specs=[in_spec],
            out_specs=out_spec,
        ),
        compiler_params=pltpu.CompilerParams(
            dimension_semantics=("parallel", "parallel"),
        ),
    )(x)


if __name__ == "__main__":
    key = jax.random.PRNGKey(0)
    batch, seq, d_model = 2, 8, 32
    x = jax.random.normal(key, (batch, seq, d_model), jnp.float32)

    out = relative_positional_encoding(x)
    out = jax.block_until_ready(out)

    # Pure-JAX reference mirroring the PyTorch forward (eval mode).
    position = jnp.arange(seq, dtype=jnp.float32)[:, None]
    div_term = jnp.exp(
        jnp.arange(0, d_model, 2, dtype=jnp.float32) * (-(math.log(10000.0) / d_model))
    )
    pe = jnp.zeros((seq, d_model), jnp.float32)
    pe = pe.at[:, 0::2].set(jnp.sin(position * div_term))
    pe = pe.at[:, 1::2].set(jnp.cos(position * div_term))
    expected = x + pe[None]

    assert out.shape == x.shape and out.dtype == x.dtype
    max_err = float(jnp.max(jnp.abs(out - expected)))
    assert jnp.allclose(out, expected, atol=1e-5, rtol=1e-5), max_err

    print("KERNEL_OK")
</pallas_src>

<mosaic_0001>
module attributes {stable_mosaic.version = 11 : i64} {
  func.func @_rel_pos_encoding_kernel(%arg0: i32, %arg1: i32, %arg2: memref<1x8x32xf32, #tpu.memory_space<vmem>>, %arg3: memref<1x8x32xf32, #tpu.memory_space<vmem>>) attributes {dimension_semantics = [#tpu.dimension_semantics<parallel>, #tpu.dimension_semantics<parallel>], iteration_bounds = array<i64: 2, 1>, scalar_prefetch = 0 : i64, scratch_operands = 0 : i64, tpu.core_type = #tpu.core_type<tc>, window_params = [{transform_indices = @transform_0, window_bounds = array<i64: 1, 8, 32>}, {transform_indices = @transform_1, window_bounds = array<i64: 1, 8, 32>}]} {
    %c0 = arith.constant 0 : index
    %c0_0 = arith.constant 0 : index
    %c0_1 = arith.constant 0 : index
    %0 = vector.load %arg2[%c0, %c0_0, %c0_1] : memref<1x8x32xf32, #tpu.memory_space<vmem>>, vector<1x8x32xf32>
    %1 = vector.shape_cast %0 : vector<1x8x32xf32> to vector<8x32xf32>
    %2 = tpu.iota {dimensions = array<i32: 0>} : vector<8x32xi32>
    %3 = tpu.iota {dimensions = array<i32: 1>} : vector<8x32xi32>
    %c8_i32 = arith.constant 8 : i32
    %4 = arith.muli %arg1, %c8_i32 : i32
    %5 = vector.broadcast %4 : i32 to vector<8x32xi32>
    %6 = arith.addi %2, %5 : vector<8x32xi32>
    %7 = arith.sitofp %6 : vector<8x32xi32> to vector<8x32xf32>
    %c2_i32 = arith.constant 2 : i32
    %c0_i32 = arith.constant 0 : i32
    %8 = arith.cmpi eq, %c2_i32, %c0_i32 : i32
    %c1_i32 = arith.constant 1 : i32
    %9 = arith.select %8, %c1_i32, %c2_i32 : i32
    %10 = vector.broadcast %9 : i32 to vector<8x32xi32>
    %11 = arith.remsi %3, %10 : vector<8x32xi32>
    %c0_i32_2 = arith.constant 0 : i32
    %12 = vector.broadcast %c0_i32_2 : i32 to vector<8x32xi32>
    %13 = arith.cmpi ne, %11, %12 : vector<8x32xi32>
    %c0_i32_3 = arith.constant 0 : i32
    %14 = vector.broadcast %c0_i32_3 : i32 to vector<8x32xi32>
    %15 = arith.cmpi slt, %11, %14 : vector<8x32xi32>
    %c0_i32_4 = arith.constant 0 : i32
    %16 = arith.cmpi slt, %9, %c0_i32_4 : i32
    %17 = vector.broadcast %16 : i1 to vector<8x32xi1>
    %18 = vector.broadcast %17 : vector<8x32xi1> to vector<8x32xi1>
    %19 = arith.xori %15, %18 : vector<8x32xi1>
    %20 = arith.andi %19, %13 : vector<8x32xi1>
    %21 = vector.broadcast %9 : i32 to vector<8x32xi32>
    %22 = arith.addi %11, %21 : vector<8x32xi32>
    %23 = arith.select %20, %22, %11 : vector<8x32xi1>, vector<8x32xi32>
    %24 = arith.subi %3, %23 : vector<8x32xi32>
    %25 = arith.sitofp %24 : vector<8x32xi32> to vector<8x32xf32>
    %c2_i32_5 = arith.constant 2 : i32
    %c0_i32_6 = arith.constant 0 : i32
    %26 = arith.cmpi eq, %c2_i32_5, %c0_i32_6 : i32
    %c1_i32_7 = arith.constant 1 : i32
    %27 = arith.select %26, %c1_i32_7, %c2_i32_5 : i32
    %28 = vector.broadcast %27 : i32 to vector<8x32xi32>
    %29 = arith.remsi %3, %28 : vector<8x32xi32>
    %c0_i32_8 = arith.constant 0 : i32
    %30 = vector.broadcast %c0_i32_8 : i32 to vector<8x32xi32>
    %31 = arith.cmpi ne, %29, %30 : vector<8x32xi32>
    %c0_i32_9 = arith.constant 0 : i32
    %32 = vector.broadcast %c0_i32_9 : i32 to vector<8x32xi32>
    %33 = arith.cmpi slt, %29, %32 : vector<8x32xi32>
    %c0_i32_10 = arith.constant 0 : i32
    %34 = arith.cmpi slt, %27, %c0_i32_10 : i32
    %35 = vector.broadcast %34 : i1 to vector<8x32xi1>
    %36 = vector.broadcast %35 : vector<8x32xi1> to vector<8x32xi1>
    %37 = arith.xori %33, %36 : vector<8x32xi1>
    %38 = arith.andi %37, %31 : vector<8x32xi1>
    %39 = vector.broadcast %27 : i32 to vector<8x32xi32>
    %40 = arith.addi %29, %39 : vector<8x32xi32>
    %41 = arith.select %38, %40, %29 : vector<8x32xi1>, vector<8x32xi32>
    %42 = arith.sitofp %41 : vector<8x32xi32> to vector<8x32xf32>
    %cst = arith.constant -0.287823141 : f32
    %43 = vector.broadcast %cst : f32 to vector<8x32xf32>
    %44 = arith.mulf %25, %43 : vector<8x32xf32>
    %45 = math.exp %44 : vector<8x32xf32>
    %46 = arith.mulf %7, %45 : vector<8x32xf32>
    %cst_11 = arith.constant 1.57079637 : f32
    %47 = vector.broadcast %cst_11 : f32 to vector<8x32xf32>
    %48 = arith.mulf %42, %47 : vector<8x32xf32>
    %49 = arith.addf %46, %48 : vector<8x32xf32>
    %50 = math.sin %49 : vector<8x32xf32>
    %51 = arith.addf %1, %50 : vector<8x32xf32>
    %c0_12 = arith.constant 0 : index
    %c0_13 = arith.constant 0 : index
    %c0_14 = arith.constant 0 : index
    %52 = vector.load %arg3[%c0_12, %c0_13, %c0_14] : memref<1x8x32xf32, #tpu.memory_space<vmem>>, vector<1x8x32xf32>
    %53 = vector.shape_cast %52 : vector<1x8x32xf32> to vector<8x32xf32>
    %54 = vector.shape_cast %51 : vector<8x32xf32> to vector<1x8x32xf32>
    tpu.vector_store %arg3[%c0_12, %c0_13, %c0_14], %54 {strides = array<i32>} : memref<1x8x32xf32, #tpu.memory_space<vmem>>, vector<1x8x32xf32>,
    return
  }
  func.func @transform_0(%arg0: i32, %arg1: i32) -> (i32, i32, i32) {
    %c0_i32 = arith.constant 0 : i32
    %c0_i32_0 = arith.constant 0 : i32
    return %arg0, %arg1, %c0_i32 : i32, i32, i32
  }
  func.func @transform_1(%arg0: i32, %arg1: i32) -> (i32, i32, i32) {
    %c0_i32 = arith.constant 0 : i32
    %c0_i32_0 = arith.constant 0 : i32
    return %arg0, %arg1, %c0_i32 : i32, i32, i32
  }
}

</mosaic_0001>

<bundles_post_ra>
// kernel: tpu_custom_call.1
= control target key start
LH: loop header
LB: loop body
LE: loop exit
PB: predicated region body
PF: predicated region fallthrough
CT: control target
= control target key end

     0   :  { %6 = vsyncpa [#allocation3], 0  ;;  %s808_s0 = inlined_call_operand.hbm [shape: f32[2,8,32], index: 0, kind: input, shape index: {}]   ;;  %s809_s1 = inlined_call_operand.hbm [shape: f32[2,8,32], index: 1, kind: output, shape index: {}]  }
   0x1   :  { %8 = vsyncpa [#allocation3 + $0x1], 0 }
   0x2   :  { %9 = vsyncpa [#allocation4], 0 }
   0x3   :  { %11 = vsyncpa [#allocation4 + $0x1], 0  ;;  %s608_s6 = smov 0   ;;  %s610_s7 = smov 0  }
   0x4   :  { %s612_s8 = smov 0   ;;  %s614_s9 = smov 0  }
   0x5   :  { %s616_s10 = smov 0   ;;  %s618_s11 = smov 0  }
   0x6 LB: > { %s381_s12 = sadd.s32 4294967295, %s588_s11   ;;  %s382_s13 = sadd.s32 4294967294, %s588_s11   ;;  %s588_s11 = sphi %s618_s11, %s17_s11   ;;  %s584_s10 = sphi %s616_s10, %s825_s10   ;;  %s580_s9 = sphi %s614_s9, %s824_s9   ;;  %s576_s8 = sphi %s612_s8, %s823_s8   ;;  %s572_s7 = sphi %s610_s7, %s822_s7   ;;  %s568_s6 = sphi %s608_s6, %s821_s6  }
   0x7   : > { %s29_s14 = sadd.s32 1, %s584_s10  ;;  %s38_s15 = sadd.s32 1, %s576_s8 }
   0x8   : > { %p31_p0 = scmp.ge.s32.totalorder %s29_s14, 2  ;;  %p45_p1 = scmp.ne.s32.totalorder %s576_s8, %s572_s7 }
   0x9   : > { %p46_p2 = scmp.eq.s32.totalorder %s588_s11, 0  ;;  %p51_p3 = scmp.ne.s32.totalorder %s572_s7, %s568_s6 }
   0xa   : > { %s827_s14 = smov (%p31_p0, %s29_s14), 0  ;;  %p52_p5 = scmp.eq.s32.totalorder %s381_s12, 0 }
   0xb   : > { %p649_p4 = por %p46_p2, %p45_p1  ;;  %s33_s17 = ssub.s32 %s584_s10, %s827_s14 }
   0xc   : > { %p77_p6 = scmp.eq.s32.totalorder %s381_s12, 1  ;;  %p36_p7 = scmp.eq.s32.totalorder %s33_s17, 0 }
   0xd   : > { %p655_p8 = por %p52_p5, %p51_p3  ;;  %p83_p10 = scmp.eq.s32.totalorder %s382_s13, 1 }
   0xe   : > { %p659_p9 = por %p77_p6, %p45_p1  ;;  %p414_p13 = scmp.lt.s32.totalorder %s588_s11, 2 }
   0xf   : > { %s664_s20 = scalar_select %p36_p7, %s576_s8, %s38_s15  }
  0x10   : > { %s813_s19 = scalar_select %p659_p9, 1, 0 }
  0x11   : > { %p666_p11 = por %p83_p10, %p51_p3  ;;  %s103_s22 = sand.u32 1, %s576_s8  }
  0x12   : > { %s385_s23 = sshll.u32 %s103_s22, 3  ;;  %s386_s24 = sshll.u32 %s584_s10, 7 }
  0x13   : > { %s814_s21 = scalar_select %p666_p11, 1, 0 }
  0x14   : > { %s677_s27 = scalar_lea.hbm %s808_s0, %s386_s24  ;;  %s107_s28 = scalar_lea.vmem [#allocation2], %s385_s23 }
  0x15   : > { %s115_s29 = sshll.u32 %s107_s28, 4  ;;  %p683_p0 = pnand %p414_p13, %p649_p4  ;;  %s679_s29 = int_to_ptr.vmem [resolvable:$true] %s115_s29 }
  0x16   : > { %s104_s2 = scalar_lea.sflag [#allocation3], %s103_s22  ;;  %s476_s3 = scalar_lea.hbm %s677_s27, 128 }
  0x17   : > { %p477_p3 = scmp.ne.s32.totalorder %s677_s27, %s476_s3  ;;  %p478_p5 = pneg %p683_p0 }
  0x18   : > { %s481_s12 = scalar_lea.hbm %s808_s0, 256  ;;  %p482_p4 = scmp.lt.u32.totalorder %s677_s27, %s808_s0 }
  0x19   : > { %p479_p6 = pnand %p478_p5, %p477_p3  ;;  %p483_p10 = scmp.lt.u32.totalorder %s481_s12, %s476_s3 }
  0x1a   : > { %p485_p12 = scmp.lt.u32.totalorder %s476_s3, %s677_s27 }
  0x1b   : > { %p480_p7 = pneg %p479_p6  ;;  %p484_p13 = por %p483_p10, %p482_p4 }
  0x1d   : > { %p486_p1 = por %p485_p12, %p484_p13 }
  0x1f   : > { %p487_p2 = pnand %p486_p1, %p480_p7 }
  0x21   : > { %490 = shalt.err (!%p487_p2)
}
  0x22   : > { %s491_s16 = scalar_lea.vmem %s679_s29, 128  ;;  %s590_s17 = smov [#allocation2]  }
  0x23   : > { %p492_p3 = scmp.ne.s32.totalorder %s679_s29, %s491_s16  ;;  %s496_s22 = sshll.u32 %s590_s17, 4  ;;  %s497_s22 = int_to_ptr.vmem [resolvable:$false] %s496_s22 }
  0x24   : > { %s498_s23 = scalar_lea.vmem %s497_s22, 256  ;;  %p499_p9 = scmp.lt.s32.totalorder %s679_s29, %s497_s22 }
  0x25   : > { %p494_p6 = pnand %p492_p3, %p478_p5  ;;  %p500_p4 = scmp.lt.s32.totalorder %s498_s23, %s491_s16 }
  0x27   : > { %p495_p11 = pneg %p494_p6  ;;  %p501_p10 = por %p500_p4, %p499_p9 }
  0x29   : > { %p502_p12 = pnand %p501_p10, %p495_p11 }
  0x2b   : > { %505 = shalt.err (!%p502_p12)
}
  0x2c   : > { %409 = dma.hbm_to_vmem [thread:$0]  (!%p683_p0), %s677_s27, 128, %s679_s29, %s104_s2  }
  0x2d   : > { %p816_p1 = scmp.lt.s32.totalorder %s588_s11, 3  ;;  %p817_p2 = scmp.ge.s32.totalorder %s588_s11, 1 }
  0x2f   : > { %p121_p5 = pnand %p817_p2, %p816_p1 }
  0x30   : > { %s719_s24 = sand.u32 (!%p121_p5), 1, %s572_s7  }
  0x31   : > { %124 = sbr.rel (%p121_p5) target bundleno = 182 (0xb6), region = 24  ;;  %s388_s25 = sshll.u32 (!%p121_p5), %s719_s24, 3 }
  0x32   : > { %s127_s26 = scalar_lea.sflag (!%p121_p5), [#allocation3], %s719_s24  ;;  %s725_s28 = scalar_lea.vmem (!%p121_p5), [#allocation2], %s388_s25 }
  0x38   : > { %559 = dma.done.wait (%p655_p8), %s127_s26, 128  }
  0x39   : > { %561 = vsyncadd (%p655_p8), %s127_s26, 4294967168  ;;  %v150_v0 = vlaneseq  ;;  %v591_v25 = vmov 683565275   ;;  %v592_v27 = vmov 2475754826   ;;  %s148_s18 = scalar_lea.vmem [#allocation5], %s388_s25 }
  0x3a   : > { %v593_v29 = vmov 2131351028   ;;  %v594_v31 = vmov 2102212464   ;;  %v595_v33 = vmov 920167782  }
  0x3b   : > { %v153_v1 = vand.u32 127, %v150_v0  ;;  %v151_v7 = vshrl.u32 %v150_v0, 7  ;;  %v596_v40 = vmov 1326507024   ;;  %s301_s27 = sshll.u32 %s148_s18, 4  ;;  %s395_s29 = sshll.u32 %s580_s9, 7  ;;  %s756_s27 = int_to_ptr.vmem [resolvable:$true] %s301_s27 }
  0x3c   : > { %vm284_vm13 = vcmask 261120   ;;  %s761_s3 = scalar_lea.hbm %s809_s1, %s395_s29  ;;  %s287_s4 = scalar_lea.sflag [#allocation4], %s719_s24 }
  0x3d   : > { %v162_v2 = vand.u32 1, %v153_v1  ;;  %v157_v9 = vcvt.s32.f32 %v151_v7  ;;  %s506_s5 = scalar_lea.vmem %s756_s27, 128  ;;  %p818_p9 = scmp.ne.s32.totalorder %s813_s19, 0 }
  0x3e   : > { %p507_p8 = scmp.ne.s32.totalorder %s756_s27, %s506_s5  ;;  %s597_s9 = smov [#allocation5]  }
  0x3f   : > { %v170_v3 = vsub.s32 %v153_v1, %v162_v2  ;;  %v172_v8 = vcvt.s32.f32 %v162_v2  ;;  %s510_s12 = sshll.u32 %s597_s9, 4  ;;  %s511_s12 = int_to_ptr.vmem [resolvable:$false] %s510_s12 }
  0x40   : > { %p508_p11 = pnand %p507_p8, %p818_p9  ;;  %s512_s13 = scalar_lea.vmem %s511_s12, 256 }
  0x41   : > { %v171_v4 = vcvt.s32.f32 %v170_v3  ;;  %v177_v10 = vmul.f32 1.5707964, %v172_v8  ;;  %p513_p7 = scmp.lt.s32.totalorder %s756_s27, %s511_s12  ;;  %p514_p13 = scmp.lt.s32.totalorder %s512_s13, %s506_s5 }
  0x42   : > { %p509_p0 = pneg %p508_p11 }
  0x43   : > { %v173_v5 = vmul.f32 -0.28782314, %v171_v4  ;;  %p515_p3 = por %p514_p13, %p513_p7 }
  0x45   : > { %v174_v6 = vmul.f32 1.442695, %v173_v5  ;;  %p516_p6 = pnand %p515_p3, %p509_p0 }
  0x47   : > { %470 = vpow2.f32 %v174_v6 }
  0x51   : > { %v471_v11 = vpop.eup %470 }
  0x52   : > { %v176_v12 = vmul.f32 %v471_v11, %v157_v9 }
  0x54   : > { %v731_v13 = vadd.f32 %v177_v10, %v176_v12 }
  0x56   : > { %v182_v14 = vand.u32 2139095040, %v731_v13  ;;  %v179_v16 = vand.u32 2147483647, %v731_v13  ;;  %vm181_vm7 = vcmp.lt.s32.totalorder %v731_v13, 0  ;;  %vm271_vm12 = vweird.f32 %v731_v13 }
  0x58   : > { %v183_v15 = vshrl.u32 %v182_v14, 23  ;;  %v186_v19 = vand.u32 8388607, %v179_v16  ;;  %vm180_vm8 = vcmp.le.f32.partialorder %v179_v16, 0.7853982 }
  0x5a   : > { %v390_v17 = vadd.s32 4294967169, %v183_v15  ;;  %v187_v22 = vor.u32 8388608, %v186_v19 }
  0x5c   : > { %v189_v18 = vadd.s32 1, %v390_v17  ;;  %v227_v42 = vshll.u32 %v187_v22, 8 }
  0x5e   : > { %vm190_vm0 = vcmp.gt.s32.totalorder %v189_v18, 0 }
  0x5f   : > { %v191_v20 = vsel %vm190_vm0, %v189_v18, 0 }
  0x60   : > { %v193_v21 = vand.u32 31, %v191_v20  ;;  %v192_v23 = vshrl.u32 %v191_v20, 5 }
  0x62   : > { %v194_v24 = vsub.s32 32, %v193_v21  ;;  %v196_v26 = vshll.u32 %v591_v25, %v193_v21  ;;  %v199_v28 = vshll.u32 %v592_v27, %v193_v21  ;;  %v202_v30 = vshll.u32 %v593_v29, %v193_v21 }
  0x63   : > { %v205_v32 = vshll.u32 %v594_v31, %v193_v21  ;;  %v208_v34 = vshll.u32 %v595_v33, %v193_v21  ;;  %vm211_vm1 = vcmp.lt.s32.totalorder %v192_v23, 1  ;;  %vm214_vm2 = vcmp.lt.s32.totalorder %v192_v23, 4 }
  0x64   : > { %v195_v35 = vshrl.u32 %v591_v25, %v194_v24  ;;  %v197_v36 = vshrl.u32 %v592_v27, %v194_v24  ;;  %v200_v37 = vshrl.u32 %v593_v29, %v194_v24  ;;  %v203_v38 = vshrl.u32 %v594_v31, %v194_v24 }
  0x65   : > { %v206_v39 = vshrl.u32 %v595_v33, %v194_v24  ;;  %v209_v41 = vshrl.u32 %v596_v40, %v194_v24  ;;  %vm212_vm3 = vcmp.lt.s32.totalorder %v192_v23, 2  ;;  %vm213_vm4 = vcmp.lt.s32.totalorder %v192_v23, 3 }
  0x66   : > { %v198_v43 = vor.u32 %v197_v36, %v196_v26  ;;  %v201_v44 = vor.u32 %v200_v37, %v199_v28  ;;  %v204_v45 = vor.u32 %v203_v38, %v202_v30 }
  0x67   : > { %v207_v46 = vor.u32 %v206_v39, %v205_v32  ;;  %v210_v47 = vor.u32 %v209_v41, %v208_v34  ;;  %v149_v39 = vld [vmem:[%s725_s28] sm:$0xff] }
  0x68   : > { %v215_v48 = vsel %vm211_vm1, %v195_v35, %v198_v43  ;;  %v216_v49 = vsel %vm214_vm2, %v204_v45, 2102212464  ;;  %v219_v50 = vsel %vm211_vm1, %v198_v43, %v201_v44  ;;  %v223_v51 = vsel %vm211_vm1, %v201_v44, %v204_v45 }
  0x69   : > { %v217_v52 = vsel %vm213_vm4, %v201_v44, %v216_v49  ;;  %v220_v53 = vsel %vm214_vm2, %v207_v46, 920167782  ;;  %v224_v54 = vsel %vm214_vm2, %v210_v47, 1326507024 }
  0x6a   : > { %v221_v55 = vsel %vm213_vm4, %v204_v45, %v220_v53  ;;  %v225_v56 = vsel %vm213_vm4, %v207_v46, %v224_v54  ;;  %v218_v57 = vsel %vm212_vm3, %v215_v48, %v217_v52 }
  0x6b   : > { %v222_v58 = vsel %vm212_vm3, %v219_v50, %v221_v55  ;;  %v226_v59 = vsel %vm212_vm3, %v223_v51, %v225_v56  ;;  %v234_v0 = vmul.u32 %v227_v42, %v218_v57 }
  0x6c   : > { %v737_v60 = vmul.u32.u64.low %v227_v42, %v226_v59  ;;  %v738_v61 = vmul.u32.u64.high %v227_v42, %v226_v59, %v737_v60  ;;  %v740_v62 = vmul.u32.u64.low %v227_v42, %v222_v58  ;;  %v741_v63 = vmul.u32.u64.high %v227_v42, %v222_v58, %v740_v62 }
  0x6e   : > { %vm236_vm5 = vc.u32 %v738_v61, %v740_v62  ;;  %v237_v1 = vadd.s32 1, %v741_v63  ;;  %v235_v12 = vadd.s32 %v740_v62, %v738_v61 }
  0x70   : > { %v238_v2 = vsel %vm236_vm5, %v237_v1, %v741_v63 }
  0x71   : > { %v239_v3 = vadd.s32 %v238_v2, %v234_v0 }
  0x73   : > { %v240_v4 = vadd.s32 536870912, %v239_v3 }
  0x75   : > { %v241_v5 = vshrl.u32 %v240_v4, 30 }
  0x77   : > { %v242_v6 = vshll.u32 %v241_v5, 30  ;;  %v265_v26 = vsub.s32 4, %v241_v5 }
  0x79   : > { %v243_v7 = vsub.s32 %v239_v3, %v242_v6  ;;  %v266_v29 = vsel %vm181_vm7, %v265_v26, %v241_v5 }
  0x7a   : > { %v268_v32 = vsel %vm180_vm8, 0, %v266_v29 }
  0x7b   : > { %v245_v8 = vsub.s32 0, %v243_v7  ;;  %v272_v33 = vadd.s32 3, %v268_v32 }
  0x7d   : > { %v391_v9 = vmin.u32 %v245_v8, %v243_v7  ;;  %v273_v34 = vand.u32 3, %v272_v33 }
  0x7f   : > { %v247_v10 = vclz %v391_v9  ;;  %vm278_vm9 = vcmp.eq.s32.totalorder %v273_v34, 2  ;;  %vm275_vm10 = vcmp.eq.s32.totalorder %v273_v34, 0  ;;  %vm274_vm11 = vcmp.lt.s32.totalorder %v273_v34, 2 }
  0x81   : > { %v392_v11 = vadd.s32 4294967294, %v247_v10 }
  0x83   : > { %vm393_vm6 = vcmp.lt.s32.totalorder %v392_v11, 0 }
  0x84   : > { %v250_v14 = vsel %vm393_vm6, 0, %v392_v11 }
  0x85   : > { %v251_v15 = vsub.s32 32, %v250_v14  ;;  %v252_v17 = vshll.u32 %v243_v7, %v250_v14  ;;  %v255_v18 = vsub.s32 4294967266, %v250_v14 }
  0x87   : > { %v253_v19 = vshrl.u32 %v235_v12, %v251_v15  ;;  %v256_v20 = vadd.s32 127, %v255_v18 }
  0x89   : > { %v254_v21 = vor.u32 %v253_v19, %v252_v17  ;;  %v257_v22 = vshll.u32 %v256_v20, 23 }
  0x8b   : > { %v258_v23 = vor.u32 4788187, %v257_v22  ;;  %v261_v24 = vcvt.s32.f32 %v254_v21 }
  0x8d   : > { %v259_v25 = vand.u32 2147483647, %v258_v23 }
  0x8f   : > { %v262_v27 = vmul.f32 %v261_v24, %v259_v25 }
  0x91   : > { %v263_v28 = vxor.u32 2147483648, %v262_v27 }
  0x93   : > { %v264_v30 = vsel %vm181_vm7, %v263_v28, %v262_v27 }
  0x94   : > { %v267_v31 = vsel %vm180_vm8, %v731_v13, %v264_v30 }
  0x95   : > { %472 = vcosq.f32 %v267_v31 }
  0x96   : > { %474 = vsinq.f32 %v267_v31 }
  0x9f   : > { %v473_v35 = vpop.eup %472 }
  0xa0   : > { %v475_v36 = vpop.eup %474  ;;  %v279_v37 = vxor.u32 2147483648, %v473_v35 }
  0xa1   : > { %v276_v16 = vxor.u32 2147483648, %v475_v36 }
  0xa2   : > { %v280_v38 = vsel %vm278_vm9, %v279_v37, %v475_v36 }
  0xa3   : > { %v277_v40 = vsel %vm275_vm10, %v473_v35, %v276_v16 }
  0xa4   : > { %v281_v41 = vsel %vm274_vm11, %v277_v40, %v280_v38 }
  0xa5   : > { %v282_v42 = vsel %vm271_vm12, nan, %v281_v41 }
  0xa6   : > { %v283_v43 = vadd.f32 %v282_v42, %v149_v39 }
  0xa8   : > { %285 = vst.msk [vmem:[%s148_s18] sm:$0xff] %vm284_vm13, %v283_v43 }
  0xa9   : > { %519 = shalt.err (!%p516_p6)
}
  0xaa   : > { %s520_s15 = scalar_lea.hbm %s761_s3, 128  ;;  %s524_s22 = scalar_lea.hbm %s809_s1, 256 }
  0xab   : > { %p521_p4 = scmp.ne.s32.totalorder %s761_s3, %s520_s15  ;;  %p525_p1 = scmp.lt.u32.totalorder %s761_s3, %s809_s1 }
  0xac   : > { %p526_p2 = scmp.lt.u32.totalorder %s524_s22, %s520_s15  ;;  %p528_p8 = scmp.lt.u32.totalorder %s520_s15, %s761_s3 }
  0xad   : > { %p522_p10 = pnand %p521_p4, %p818_p9 }
  0xae   : > { %p527_p5 = por %p526_p2, %p525_p1 }
  0xaf   : > { %p523_p12 = pneg %p522_p10 }
  0xb0   : > { %p529_p11 = por %p528_p8, %p527_p5 }
  0xb2   : > { %p530_p0 = pnand %p529_p11, %p523_p12 }
  0xb4   : > { %533 = shalt.err (!%p530_p0)
}
  0xb5   : > { %404 = dma.vmem_to_hbm [thread:$0]  (%p818_p9), %s756_s27, 128, %s761_s3, %s287_s4  }
  0xb6 PF: > { %s313_s25 = sand.u32 1, %s568_s6   ;;  %p819_p7 = scmp.ne.s32.totalorder %s814_s21, 0 }
  0xb7   : > { %p820_p13 = scmp.ge.s32.totalorder %s588_s11, 2  ;;  %s314_s26 = scalar_lea.sflag [#allocation4], %s313_s25 }
  0xb9   : > { %p411_p3 = pnand %p820_p13, %p819_p7 }
  0xbb   : > { %563 = dma.done.wait (!%p411_p3), %s314_s26, 128  }
  0xbc   : > { %565 = vsyncadd (!%p411_p3), %s314_s26, 4294967168  ;;  %s17_s11 = sadd.s32 1, %s588_s11   ;;  %s821_s6 = smov %s572_s7 }
  0xbd   : > { %p14_p6 = scmp.ge.s32.totalorder %s17_s11, 4   ;;  %s822_s7 = smov %s576_s8 }
  0xbe   : > { %s823_s8 = smov %s664_s20  ;;  %s824_s9 = smov %s584_s10 }
  0xbf   : > { %s825_s10 = smov %s827_s14  ;;  %16 = sbr.rel (!%p14_p6) target bundleno = 6 (0x6), region = 69 }
  0xc6   :  { %319 = vsyncpa [#allocation3], 1 }
  0xc7   :  { %321 = vsyncpa [#allocation3 + $0x1], 1 }
  0xc8   :  { %322 = vsyncpa [#allocation4], 1 }
  0xc9   :  { %324 = vsyncpa [#allocation4 + $0x1], 1 }

</bundles_post_ra>
